<compile_context>
chip_gen: v5e
topology: v5e:2x2
jax: 0.10.0
libtpu: 0.0.40
codegen_flags: <defaults>
</compile_context>

<pallas_src>
import functools

import jax
import jax.numpy as jnp
from jax import lax
from jax.experimental import pallas as pl
from jax.experimental.pallas import tpu as pltpu


# ---------------------------------------------------------------------------
# small helpers
# ---------------------------------------------------------------------------
def _device_kind():
    try:
        return jax.devices()[0].device_kind.lower()
    except Exception:
        return ""


def _vmem_limit_bytes():
    cap = None
    try:
        cap = int(pltpu.get_tpu_info().vmem_capacity_bytes)
    except Exception:
        cap = None
    if cap is None:
        cap = 64 * 1024 * 1024 if "v7" in _device_kind() else 128 * 1024 * 1024
    # leave headroom for compiler-internal scratch
    return max(32 * 1024 * 1024, cap - 16 * 1024 * 1024)


def _spec(shape, index_map, *, buffers=None):
    """BlockSpec with optional explicit buffer count (graceful fallback)."""
    if buffers is not None and hasattr(pl, "Buffered"):
        try:
            return pl.BlockSpec(shape, index_map, pipeline_mode=pl.Buffered(buffers))
        except TypeError:
            pass
    return pl.BlockSpec(shape, index_map)


def _softmax_rows(scores, exp_dtype):
    """Row-wise softmax of an f32 (rows, cols) block.

    exp in `exp_dtype` (bf16 on v6e/v7x -> EUP 2x), row-sum + normalization in f32,
    EUP-approx reciprocal for the denominator.
    """
    m = jnp.max(scores, axis=-1, keepdims=True)
    e = jnp.exp((scores - m).astype(exp_dtype))
    denom = jnp.sum(e.astype(jnp.float32), axis=-1, keepdims=True)
    return e.astype(jnp.float32) * pl.reciprocal(denom, approx=True)


# ---------------------------------------------------------------------------
# kernel
# ---------------------------------------------------------------------------
def _attention_kv_kernel(
        mask_q_ref, mask_k_ref, lx_ref, tx_ref,
        wq_ref, bq_ref, wkv_ref, bkv_ref,
        wcq_ref, bcq_ref, wckv_ref, bckv_ref,
        wffn_ref, bffn_ref,
        out_ref,
        k_self_ref, v_self_ref, k_cross_ref, v_cross_ref,
        *, dim, block_q, compute_dtype, exp_dtype):
    C = dim                       # padded (lane-dense) hidden size
    f32 = jnp.float32
    cd = compute_dtype
    qt = pl.program_id(1)

    # ---- K/V projections: computed once per batch element (query tile 0) with
    # merged (C, 2C) weights, cached in VMEM scratch, reused by every query tile.
    @pl.when(qt == 0)
    def _():
        lx = lx_ref[0].astype(cd)                                      # (M, C)
        tx = tx_ref[0].astype(cd)                                      # (M, C)
        kv_s = jnp.dot(lx, wkv_ref[...], preferred_element_type=f32) + bkv_ref[0]
        k_self_ref[...] = kv_s[:, :C].astype(cd)
        v_self_ref[...] = kv_s[:, C:].astype(cd)
        kv_c = jnp.dot(tx, wckv_ref[...], preferred_element_type=f32) + bckv_ref[0]
        k_cross_ref[...] = kv_c[:, :C].astype(cd)
        v_cross_ref[...] = kv_c[:, C:].astype(cd)

    # ---- attention mask, built on the VPU from the raw (B, M) mask:
    # masked[i, j] = (mask[q_i] * mask[k_j] == 0)
    #            ==  PyTorch ((mask_exp @ mask_exp^T / C).bool() == False)
    masked = (mask_q_ref[0] * mask_k_ref[0]) == 0.0                    # (block_q, M)

    # Query rows of this tile, sliced from the resident full-sequence block.
    row0 = pl.multiple_of(qt * block_q, block_q)
    x_q = lx_ref[0, pl.ds(row0, block_q), :].astype(cd)                # (block_q, C)

    # ---- self attention (1/sqrt(dim) scale pre-folded into wq/bq) ----
    q = jnp.dot(x_q, wq_ref[...], preferred_element_type=f32) + bq_ref[0]
    s = lax.dot_general(q.astype(cd), k_self_ref[...],
                        (((1,), (1,)), ((), ())),
                        preferred_element_type=f32)                    # (block_q, M)
    s = jnp.where(masked, -10000.0, s)
    p = _softmax_rows(s, exp_dtype)
    sa = jnp.dot(p.astype(cd), v_self_ref[...],
                 preferred_element_type=f32)                           # (block_q, C)

    # ---- cross attention: q from self-attn output, k/v from text_x ----
    cq = jnp.dot(sa.astype(cd), wcq_ref[...],
                 preferred_element_type=f32) + bcq_ref[0]
    s2 = lax.dot_general(cq.astype(cd), k_cross_ref[...],
                         (((1,), (1,)), ((), ())),
                         preferred_element_type=f32)
    s2 = jnp.where(masked, -10000.0, s2)
    p2 = _softmax_rows(s2, exp_dtype)
    ca = jnp.dot(p2.astype(cd), v_cross_ref[...],
                 preferred_element_type=f32)                           # (block_q, C)

    # ---- ffn ----
    out = jnp.dot(ca.astype(cd), wffn_ref[...],
                  preferred_element_type=f32) + bffn_ref[0]
    out_ref[0] = out.astype(out_ref.dtype)


# ---------------------------------------------------------------------------
# wrapper
# ---------------------------------------------------------------------------
def attention_kv_forward(layout_x, text_x, mask, params, *, dim,
                         block_q=None, compute_dtype=jnp.bfloat16,
                         exp_dtype=None):
    B, M, C = layout_x.shape
    assert C == dim
    assert M % 8 == 0, "sequence length must be a multiple of 8 (sublane)"
    out_dtype = layout_x.dtype
    scale = dim ** (-0.5)
    f32 = jnp.float32
    cd = compute_dtype

    kind = _device_kind()
    newer = ("v6" in kind) or ("v7" in kind)     # bf16 VPU/EUP, 256-wide MXU

    if block_q is None:
        block_q = 256 if newer else 128
    block_q = min(block_q, M)
    row_align = 16 if cd == jnp.bfloat16 else 8
    if M % block_q != 0 or (block_q != M and block_q % row_align != 0):
        block_q = M                              # fall back to a single query tile
    num_q_tiles = M // block_q

    if exp_dtype is None:
        exp_dtype = cd if newer else f32         # f32 exp on v5e (no bf16 EUP)

    # ---- pad the hidden dim to a lane-dense multiple of 128 (exact math:
    # padded weight rows/cols and biases are zero; padded output cols sliced off).
    Cp = ((C + 127) // 128) * 128

    def pad_w(w):                                # (C, C) -> (Cp, Cp)
        return jnp.pad(w, ((0, Cp - C), (0, Cp - C)))

    def pad_b(b):                                # (C,) -> (1, Cp)
        return jnp.pad(b, (0, Cp - C)).reshape(1, Cp)

    w_qkv = params["w_qkv"].astype(f32)
    b_qkv = params["b_qkv"].astype(f32)
    w_q, w_k, w_v = w_qkv[:, :C], w_qkv[:, C:2 * C], w_qkv[:, 2 * C:]
    b_q, b_k, b_v = b_qkv[:C], b_qkv[C:2 * C], b_qkv[2 * C:]

    # fold the 1/sqrt(dim) attention scale into the q projections (free VPU win)
    w_q_s = pad_w(w_q * scale).astype(cd)
    b_q_s = pad_b(b_q * scale)
    w_kv = jnp.concatenate([pad_w(w_k), pad_w(w_v)], axis=1).astype(cd)   # (Cp, 2Cp)
    b_kv = jnp.concatenate([pad_b(b_k), pad_b(b_v)], axis=1)              # (1, 2Cp)

    w_cq_s = pad_w(params["w_cq"].astype(f32) * scale).astype(cd)
    b_cq_s = pad_b(params["b_cq"].astype(f32) * scale)
    w_ckv = params["w_ckv"].astype(f32)
    b_ckv = params["b_ckv"].astype(f32)
    w_ckv_m = jnp.concatenate([pad_w(w_ckv[:, :C]), pad_w(w_ckv[:, C:])],
                              axis=1).astype(cd)                          # (Cp, 2Cp)
    b_ckv_m = jnp.concatenate([pad_b(b_ckv[:C]), pad_b(b_ckv[C:])], axis=1)

    w_ffn = pad_w(params["w_ffn"].astype(f32)).astype(cd)
    b_ffn = pad_b(params["b_ffn"].astype(f32))

    lx = jnp.pad(layout_x, ((0, 0), (0, 0), (0, Cp - C))).astype(cd)
    tx = jnp.pad(text_x, ((0, 0), (0, 0), (0, Cp - C))).astype(cd)
    mask_f = mask.astype(f32)
    mask_q = mask_f[:, :, None]                  # (B, M, 1) query-row oriented
    mask_k = mask_f[:, None, :]                  # (B, 1, M) key-column oriented

    # grid-constant operands: single-buffered (second pipeline buffer never used)
    const = lambda shape: _spec(shape, lambda b, t: (0, 0), buffers=1)

    kernel = functools.partial(_attention_kv_kernel, dim=Cp, block_q=block_q,
                               compute_dtype=cd, exp_dtype=exp_dtype)

    out = pl.pallas_call(
        kernel,
        out_shape=jax.ShapeDtypeStruct((B, M, Cp), out_dtype),
        grid_spec=pltpu.PrefetchScalarGridSpec(
            num_scalar_prefetch=0,
            grid=(B, num_q_tiles),
            in_specs=[
                pl.BlockSpec((1, block_q, 1), lambda b, t: (b, t, 0)),   # mask_q
                pl.BlockSpec((1, 1, M), lambda b, t: (b, 0, 0)),         # mask_k
                pl.BlockSpec((1, M, Cp), lambda b, t: (b, 0, 0)),        # layout_x
                _spec((1, M, Cp), lambda b, t: (b, 0, 0), buffers=1),    # text_x
                const((Cp, Cp)), const((1, Cp)),                         # w_q b_q (scaled)
                const((Cp, 2 * Cp)), const((1, 2 * Cp)),                 # w_kv b_kv
                const((Cp, Cp)), const((1, Cp)),                         # w_cq b_cq (scaled)
                const((Cp, 2 * Cp)), const((1, 2 * Cp)),                 # w_ckv b_ckv
                const((Cp, Cp)), const((1, Cp)),                         # w_ffn b_ffn
            ],
            out_specs=pl.BlockSpec((1, block_q, Cp), lambda b, t: (b, t, 0)),
            scratch_shapes=[pltpu.VMEM((M, Cp), cd)] * 4,                # K/V caches
        ),
        compiler_params=pltpu.CompilerParams(
            dimension_semantics=("parallel", "arbitrary"),
            vmem_limit_bytes=_vmem_limit_bytes()),
    )(mask_q, mask_k, lx, tx,
      w_q_s, b_q_s, w_kv, b_kv,
      w_cq_s, b_cq_s, w_ckv_m, b_ckv_m,
      w_ffn, b_ffn)

    return out[:, :, :C] if Cp != C else out


# ---------------------------------------------------------------------------
# pure-JAX reference + test harness
# ---------------------------------------------------------------------------
def _reference_forward(layout_x, text_x, mask, p, dim):
    """Pure-JAX f32 mirror of the PyTorch Attention_kv.forward."""
    B, M, C = layout_x.shape
    scale = dim ** (-0.5)
    m = jnp.broadcast_to(mask[:, :, None], (B, M, C)).astype(jnp.float32)
    mm = jnp.einsum("bmc,bnc->bmn", m, m) / C
    masked = (mm == 0.0)

    qkv = layout_x @ p["w_qkv"] + p["b_qkv"]
    q, k, v = qkv[..., :C], qkv[..., C:2 * C], qkv[..., 2 * C:]
    attn = jnp.einsum("bmc,bnc->bmn", q, k) * scale
    attn = jnp.where(masked, -10000.0, attn)
    attn = jax.nn.softmax(attn, axis=-1)
    sa = attn @ v

    cq = sa @ p["w_cq"] + p["b_cq"]
    kv2 = text_x @ p["w_ckv"] + p["b_ckv"]
    ck, cv = kv2[..., :C], kv2[..., C:]
    a2 = jnp.einsum("bmc,bnc->bmn", cq, ck) * scale
    a2 = jnp.where(masked, -10000.0, a2)
    a2 = jax.nn.softmax(a2, axis=-1)
    ca = a2 @ cv
    return ca @ p["w_ffn"] + p["b_ffn"]


def _init_params(key, dim):
    ks = jax.random.split(key, 8)
    sw = dim ** (-0.5)
    sb = 0.1
    return {
        "w_qkv": sw * jax.random.normal(ks[0], (dim, 3 * dim), jnp.float32),
        "b_qkv": sb * jax.random.normal(ks[1], (3 * dim,), jnp.float32),
        "w_cq":  sw * jax.random.normal(ks[2], (dim, dim), jnp.float32),
        "b_cq":  sb * jax.random.normal(ks[3], (dim,), jnp.float32),
        "w_ckv": sw * jax.random.normal(ks[4], (dim, 2 * dim), jnp.float32),
        "b_ckv": sb * jax.random.normal(ks[5], (2 * dim,), jnp.float32),
        "w_ffn": sw * jax.random.normal(ks[6], (dim, dim), jnp.float32),
        "b_ffn": sb * jax.random.normal(ks[7], (dim,), jnp.float32),
    }


if __name__ == "__main__":
    B, M, dim = 2, 8, 32   # batch, seq (== max_len), hidden dim

    key = jax.random.PRNGKey(0)
    k_lx, k_tx, k_p = jax.random.split(key, 3)

    layout_x = jax.random.normal(k_lx, (B, M, dim), jnp.float32)
    text_x = jax.random.normal(k_tx, (B, M, dim), jnp.float32)
    # padding mask: 1.0 for valid tokens, 0.0 for padding
    lengths = jnp.array([6, 5], dtype=jnp.int32)
    mask = (jnp.arange(M)[None, :] < lengths[:, None]).astype(jnp.float32)

    params = _init_params(k_p, dim)

    out = attention_kv_forward(layout_x, text_x, mask, params, dim=dim)
    out = jax.block_until_ready(out)
    assert out.shape == (B, M, dim)

    # bf16 MXU operands / bf16 exp + approximate softmax reciprocal in the kernel
    # vs an exact f32 reference: allow a few percent of the output scale.
    ref = _reference_forward(layout_x, text_x, mask, params, dim)
    err = float(jnp.max(jnp.abs(out.astype(jnp.float32) - ref)))
    tol = 0.1 * float(jnp.max(jnp.abs(ref)))
    assert err <= tol, f"mismatch vs reference: max|err|={err:.4e} tol={tol:.4e}"

    print("KERNEL_OK")
</pallas_src>

<mosaic_0001>
module attributes {stable_mosaic.version = 11 : i64} {
  func.func @_attention_kv_kernel(%arg0: i32, %arg1: i32, %arg2: memref<1x8x1xf32, #tpu.memory_space<vmem>>, %arg3: memref<1x1x8xf32, #tpu.memory_space<vmem>>, %arg4: memref<1x8x128xbf16, #tpu.memory_space<vmem>>, %arg5: memref<1x8x128xbf16, #tpu.memory_space<vmem>>, %arg6: memref<128x128xbf16, #tpu.memory_space<vmem>>, %arg7: memref<1x128xf32, #tpu.memory_space<vmem>>, %arg8: memref<128x256xbf16, #tpu.memory_space<vmem>>, %arg9: memref<1x256xf32, #tpu.memory_space<vmem>>, %arg10: memref<128x128xbf16, #tpu.memory_space<vmem>>, %arg11: memref<1x128xf32, #tpu.memory_space<vmem>>, %arg12: memref<128x256xbf16, #tpu.memory_space<vmem>>, %arg13: memref<1x256xf32, #tpu.memory_space<vmem>>, %arg14: memref<128x128xbf16, #tpu.memory_space<vmem>>, %arg15: memref<1x128xf32, #tpu.memory_space<vmem>>, %arg16: memref<1x8x128xf32, #tpu.memory_space<vmem>>, %arg17: memref<8x128xbf16, #tpu.memory_space<vmem>>, %arg18: memref<8x128xbf16, #tpu.memory_space<vmem>>, %arg19: memref<8x128xbf16, #tpu.memory_space<vmem>>, %arg20: memref<8x128xbf16, #tpu.memory_space<vmem>>) attributes {dimension_semantics = [#tpu.dimension_semantics<parallel>, #tpu.dimension_semantics<arbitrary>], iteration_bounds = array<i64: 2, 1>, scalar_prefetch = 0 : i64, scratch_operands = 4 : i64, tpu.core_type = #tpu.core_type<tc>, window_params = [{transform_indices = @transform_0, window_bounds = array<i64: 1, 8, 1>}, {transform_indices = @transform_1, window_bounds = array<i64: 1, 1, 8>}, {transform_indices = @transform_2, window_bounds = array<i64: 1, 8, 128>}, {pipeline_mode = #tpu.pipeline_mode<synchronous>, transform_indices = @transform_3, window_bounds = array<i64: 1, 8, 128>}, {pipeline_mode = #tpu.pipeline_mode<synchronous>, transform_indices = @transform_4, window_bounds = array<i64: 128, 128>}, {pipeline_mode = #tpu.pipeline_mode<synchronous>, transform_indices = @transform_5, window_bounds = array<i64: 1, 128>}, {pipeline_mode = #tpu.pipeline_mode<synchronous>, transform_indices = @transform_6, window_bounds = array<i64: 128, 256>}, {pipeline_mode = #tpu.pipeline_mode<synchronous>, transform_indices = @transform_7, window_bounds = array<i64: 1, 256>}, {pipeline_mode = #tpu.pipeline_mode<synchronous>, transform_indices = @transform_8, window_bounds = array<i64: 128, 128>}, {pipeline_mode = #tpu.pipeline_mode<synchronous>, transform_indices = @transform_9, window_bounds = array<i64: 1, 128>}, {pipeline_mode = #tpu.pipeline_mode<synchronous>, transform_indices = @transform_10, window_bounds = array<i64: 128, 256>}, {pipeline_mode = #tpu.pipeline_mode<synchronous>, transform_indices = @transform_11, window_bounds = array<i64: 1, 256>}, {pipeline_mode = #tpu.pipeline_mode<synchronous>, transform_indices = @transform_12, window_bounds = array<i64: 128, 128>}, {pipeline_mode = #tpu.pipeline_mode<synchronous>, transform_indices = @transform_13, window_bounds = array<i64: 1, 128>}, {transform_indices = @transform_14, window_bounds = array<i64: 1, 8, 128>}]} {
    %c0_i32 = arith.constant 0 : i32
    %0 = arith.cmpi eq, %arg1, %c0_i32 : i32
    %1 = arith.extui %0 : i1 to i32
    %c0_i32_0 = arith.constant 0 : i32
    %2 = arith.cmpi ne, %1, %c0_i32_0 : i32
    scf.if %2 {
      %c0_44 = arith.constant 0 : index
      %c0_45 = arith.constant 0 : index
      %c0_46 = arith.constant 0 : index
      %79 = vector.load %arg4[%c0_44, %c0_45, %c0_46] : memref<1x8x128xbf16, #tpu.memory_space<vmem>>, vector<1x8x128xbf16>
      %80 = vector.shape_cast %79 : vector<1x8x128xbf16> to vector<8x128xbf16>
      %c0_47 = arith.constant 0 : index
      %c0_48 = arith.constant 0 : index
      %c0_49 = arith.constant 0 : index
      %81 = vector.load %arg5[%c0_47, %c0_48, %c0_49] : memref<1x8x128xbf16, #tpu.memory_space<vmem>>, vector<1x8x128xbf16>
      %82 = vector.shape_cast %81 : vector<1x8x128xbf16> to vector<8x128xbf16>
      %c0_50 = arith.constant 0 : index
      %c0_51 = arith.constant 0 : index
      %83 = vector.load %arg8[%c0_50, %c0_51] : memref<128x256xbf16, #tpu.memory_space<vmem>>, vector<128x256xbf16>
      %cst_52 = arith.constant dense<0.000000e+00> : vector<8x256xf32>
      %84 = tpu.matmul %80, %83, %cst_52 {dimension_numbers = #tpu.dot_dimension_numbers<[1], [0], [0], [1], [0, 0, 1, 1], [], []>} : vector<8x128xbf16>, vector<128x256xbf16>, vector<8x256xf32> -> vector<8x256xf32>
      %c0_53 = arith.constant 0 : index
      %c0_54 = arith.constant 0 : index
      %85 = vector.load %arg9[%c0_53, %c0_54] : memref<1x256xf32, #tpu.memory_space<vmem>>, vector<1x256xf32>
      %86 = vector.shape_cast %85 : vector<1x256xf32> to vector<256xf32>
      %87 = vector.shape_cast %86 : vector<256xf32> to vector<1x256xf32>
      %88 = vector.broadcast %87 : vector<1x256xf32> to vector<8x256xf32>
      %89 = arith.addf %84, %88 : vector<8x256xf32>
      %90 = vector.extract_strided_slice %89 {offsets = [0, 0], sizes = [8, 128], strides = [1, 1]} : vector<8x256xf32> to vector<8x128xf32>
      %91 = arith.truncf %90 : vector<8x128xf32> to vector<8x128xbf16>
      %c0_55 = arith.constant 0 : index
      %c0_56 = arith.constant 0 : index
      %92 = vector.load %arg17[%c0_55, %c0_56] : memref<8x128xbf16, #tpu.memory_space<vmem>>, vector<8x128xbf16>
      tpu.vector_store %arg17[%c0_55, %c0_56], %91 {strides = array<i32>} : memref<8x128xbf16, #tpu.memory_space<vmem>>, vector<8x128xbf16>,
      %93 = vector.extract_strided_slice %89 {offsets = [0, 128], sizes = [8, 128], strides = [1, 1]} : vector<8x256xf32> to vector<8x128xf32>
      %94 = arith.truncf %93 : vector<8x128xf32> to vector<8x128xbf16>
      %c0_57 = arith.constant 0 : index
      %c0_58 = arith.constant 0 : index
      %95 = vector.load %arg18[%c0_57, %c0_58] : memref<8x128xbf16, #tpu.memory_space<vmem>>, vector<8x128xbf16>
      tpu.vector_store %arg18[%c0_57, %c0_58], %94 {strides = array<i32>} : memref<8x128xbf16, #tpu.memory_space<vmem>>, vector<8x128xbf16>,
      %c0_59 = arith.constant 0 : index
      %c0_60 = arith.constant 0 : index
      %96 = vector.load %arg12[%c0_59, %c0_60] : memref<128x256xbf16, #tpu.memory_space<vmem>>, vector<128x256xbf16>
      %cst_61 = arith.constant dense<0.000000e+00> : vector<8x256xf32>
      %97 = tpu.matmul %82, %96, %cst_61 {dimension_numbers = #tpu.dot_dimension_numbers<[1], [0], [0], [1], [0, 0, 1, 1], [], []>} : vector<8x128xbf16>, vector<128x256xbf16>, vector<8x256xf32> -> vector<8x256xf32>
      %c0_62 = arith.constant 0 : index
      %c0_63 = arith.constant 0 : index
      %98 = vector.load %arg13[%c0_62, %c0_63] : memref<1x256xf32, #tpu.memory_space<vmem>>, vector<1x256xf32>
      %99 = vector.shape_cast %98 : vector<1x256xf32> to vector<256xf32>
      %100 = vector.shape_cast %99 : vector<256xf32> to vector<1x256xf32>
      %101 = vector.broadcast %100 : vector<1x256xf32> to vector<8x256xf32>
      %102 = arith.addf %97, %101 : vector<8x256xf32>
      %103 = vector.extract_strided_slice %102 {offsets = [0, 0], sizes = [8, 128], strides = [1, 1]} : vector<8x256xf32> to vector<8x128xf32>
      %104 = arith.truncf %103 : vector<8x128xf32> to vector<8x128xbf16>
      %c0_64 = arith.constant 0 : index
      %c0_65 = arith.constant 0 : index
      %105 = vector.load %arg19[%c0_64, %c0_65] : memref<8x128xbf16, #tpu.memory_space<vmem>>, vector<8x128xbf16>
      tpu.vector_store %arg19[%c0_64, %c0_65], %104 {strides = array<i32>} : memref<8x128xbf16, #tpu.memory_space<vmem>>, vector<8x128xbf16>,
      %106 = vector.extract_strided_slice %102 {offsets = [0, 128], sizes = [8, 128], strides = [1, 1]} : vector<8x256xf32> to vector<8x128xf32>
      %107 = arith.truncf %106 : vector<8x128xf32> to vector<8x128xbf16>
      %c0_66 = arith.constant 0 : index
      %c0_67 = arith.constant 0 : index
      %108 = vector.load %arg20[%c0_66, %c0_67] : memref<8x128xbf16, #tpu.memory_space<vmem>>, vector<8x128xbf16>
      tpu.vector_store %arg20[%c0_66, %c0_67], %107 {strides = array<i32>} : memref<8x128xbf16, #tpu.memory_space<vmem>>, vector<8x128xbf16>,
    } else {
    }
    %c0 = arith.constant 0 : index
    %c0_1 = arith.constant 0 : index
    %c0_2 = arith.constant 0 : index
    %3 = vector.load %arg2[%c0, %c0_1, %c0_2] : memref<1x8x1xf32, #tpu.memory_space<vmem>>, vector<1x8x1xf32>
    %4 = vector.shape_cast %3 : vector<1x8x1xf32> to vector<8x1xf32>
    %c0_3 = arith.constant 0 : index
    %c0_4 = arith.constant 0 : index
    %c0_5 = arith.constant 0 : index
    %5 = vector.load %arg3[%c0_3, %c0_4, %c0_5] : memref<1x1x8xf32, #tpu.memory_space<vmem>>, vector<1x1x8xf32>
    %6 = vector.shape_cast %5 : vector<1x1x8xf32> to vector<1x8xf32>
    %7 = vector.broadcast %4 : vector<8x1xf32> to vector<8x8xf32>
    %8 = vector.broadcast %6 : vector<1x8xf32> to vector<8x8xf32>
    %9 = arith.mulf %7, %8 : vector<8x8xf32>
    %cst = arith.constant 0.000000e+00 : f32
    %10 = vector.broadcast %cst : f32 to vector<8x8xf32>
    %11 = arith.cmpf oeq, %9, %10 : vector<8x8xf32>
    %c8_i32 = arith.constant 8 : i32
    %12 = arith.muli %arg1, %c8_i32 : i32
    %13 = tpu.assume_multiple %12, 8 : i32
    %c0_6 = arith.constant 0 : index
    %14 = arith.index_cast %13 : i32 to index
    %c0_7 = arith.constant 0 : index
    %15 = vector.load %arg4[%c0_6, %14, %c0_7] : memref<1x8x128xbf16, #tpu.memory_space<vmem>>, vector<1x8x128xbf16>
    %16 = vector.shape_cast %15 : vector<1x8x128xbf16> to vector<8x128xbf16>
    %c0_8 = arith.constant 0 : index
    %c0_9 = arith.constant 0 : index
    %17 = vector.load %arg6[%c0_8, %c0_9] : memref<128x128xbf16, #tpu.memory_space<vmem>>, vector<128x128xbf16>
    %cst_10 = arith.constant dense<0.000000e+00> : vector<8x128xf32>
    %18 = tpu.matmul %16, %17, %cst_10 {dimension_numbers = #tpu.dot_dimension_numbers<[1], [0], [0], [1], [0, 0, 1, 1], [], []>} : vector<8x128xbf16>, vector<128x128xbf16>, vector<8x128xf32> -> vector<8x128xf32>
    %c0_11 = arith.constant 0 : index
    %c0_12 = arith.constant 0 : index
    %19 = vector.load %arg7[%c0_11, %c0_12] : memref<1x128xf32, #tpu.memory_space<vmem>>, vector<1x128xf32>
    %20 = vector.shape_cast %19 : vector<1x128xf32> to vector<128xf32>
    %21 = vector.shape_cast %20 : vector<128xf32> to vector<1x128xf32>
    %22 = vector.broadcast %21 : vector<1x128xf32> to vector<8x128xf32>
    %23 = arith.addf %18, %22 : vector<8x128xf32>
    %24 = arith.truncf %23 : vector<8x128xf32> to vector<8x128xbf16>
    %c0_13 = arith.constant 0 : index
    %c0_14 = arith.constant 0 : index
    %25 = vector.load %arg17[%c0_13, %c0_14] : memref<8x128xbf16, #tpu.memory_space<vmem>>, vector<8x128xbf16>
    %cst_15 = arith.constant dense<0.000000e+00> : vector<8x8xf32>
    %26 = tpu.matmul %24, %25, %cst_15 {dimension_numbers = #tpu.dot_dimension_numbers<[1], [1], [0], [0], [0, 0, 1, 0], [], []>} : vector<8x128xbf16>, vector<8x128xbf16>, vector<8x8xf32> -> vector<8x8xf32>
    %cst_16 = arith.constant -1.000000e+04 : f32
    %27 = vector.broadcast %cst_16 : f32 to vector<8x8xf32>
    %28 = arith.select %11, %27, %26 : vector<8x8xi1>, vector<8x8xf32>
    %cst_17 = arith.constant dense<0xFF800000> : vector<8xf32>
    %29 = vector.multi_reduction <maximumf>, %28, %cst_17 [1] : vector<8x8xf32> to vector<8xf32>
    %30 = vector.shape_cast %29 : vector<8xf32> to vector<8x1xf32>
    %31 = vector.broadcast %30 : vector<8x1xf32> to vector<8x8xf32>
    %32 = arith.subf %28, %31 : vector<8x8xf32>
    %33 = math.exp %32 : vector<8x8xf32>
    %cst_18 = arith.constant dense<0.000000e+00> : vector<8xf32>
    %34 = vector.multi_reduction <add>, %33, %cst_18 [1] : vector<8x8xf32> to vector<8xf32>
    %35 = vector.shape_cast %34 : vector<8xf32> to vector<8x1xf32>
    %36 = tpu.reciprocal %35 {approx = true} : vector<8x1xf32> -> vector<8x1xf32>
    %37 = vector.broadcast %36 : vector<8x1xf32> to vector<8x8xf32>
    %38 = arith.mulf %33, %37 : vector<8x8xf32>
    %39 = arith.truncf %38 : vector<8x8xf32> to vector<8x8xbf16>
    %c0_19 = arith.constant 0 : index
    %c0_20 = arith.constant 0 : index
    %40 = vector.load %arg18[%c0_19, %c0_20] : memref<8x128xbf16, #tpu.memory_space<vmem>>, vector<8x128xbf16>
    %cst_21 = arith.constant dense<0.000000e+00> : vector<8x128xf32>
    %41 = tpu.matmul %39, %40, %cst_21 {dimension_numbers = #tpu.dot_dimension_numbers<[1], [0], [0], [1], [0, 0, 1, 1], [], []>} : vector<8x8xbf16>, vector<8x128xbf16>, vector<8x128xf32> -> vector<8x128xf32>
    %42 = arith.truncf %41 : vector<8x128xf32> to vector<8x128xbf16>
    %c0_22 = arith.constant 0 : index
    %c0_23 = arith.constant 0 : index
    %43 = vector.load %arg10[%c0_22, %c0_23] : memref<128x128xbf16, #tpu.memory_space<vmem>>, vector<128x128xbf16>
    %cst_24 = arith.constant dense<0.000000e+00> : vector<8x128xf32>
    %44 = tpu.matmul %42, %43, %cst_24 {dimension_numbers = #tpu.dot_dimension_numbers<[1], [0], [0], [1], [0, 0, 1, 1], [], []>} : vector<8x128xbf16>, vector<128x128xbf16>, vector<8x128xf32> -> vector<8x128xf32>
    %c0_25 = arith.constant 0 : index
    %c0_26 = arith.constant 0 : index
    %45 = vector.load %arg11[%c0_25, %c0_26] : memref<1x128xf32, #tpu.memory_space<vmem>>, vector<1x128xf32>
    %46 = vector.shape_cast %45 : vector<1x128xf32> to vector<128xf32>
    %47 = vector.shape_cast %46 : vector<128xf32> to vector<1x128xf32>
    %48 = vector.broadcast %47 : vector<1x128xf32> to vector<8x128xf32>
    %49 = arith.addf %44, %48 : vector<8x128xf32>
    %50 = arith.truncf %49 : vector<8x128xf32> to vector<8x128xbf16>
    %c0_27 = arith.constant 0 : index
    %c0_28 = arith.constant 0 : index
    %51 = vector.load %arg19[%c0_27, %c0_28] : memref<8x128xbf16, #tpu.memory_space<vmem>>, vector<8x128xbf16>
    %cst_29 = arith.constant dense<0.000000e+00> : vector<8x8xf32>
    %52 = tpu.matmul %50, %51, %cst_29 {dimension_numbers = #tpu.dot_dimension_numbers<[1], [1], [0], [0], [0, 0, 1, 0], [], []>} : vector<8x128xbf16>, vector<8x128xbf16>, vector<8x8xf32> -> vector<8x8xf32>
    %cst_30 = arith.constant -1.000000e+04 : f32
    %53 = vector.broadcast %cst_30 : f32 to vector<8x8xf32>
    %54 = arith.select %11, %53, %52 : vector<8x8xi1>, vector<8x8xf32>
    %cst_31 = arith.constant dense<0xFF800000> : vector<8xf32>
    %55 = vector.multi_reduction <maximumf>, %54, %cst_31 [1] : vector<8x8xf32> to vector<8xf32>
    %56 = vector.shape_cast %55 : vector<8xf32> to vector<8x1xf32>
    %57 = vector.broadcast %56 : vector<8x1xf32> to vector<8x8xf32>
    %58 = arith.subf %54, %57 : vector<8x8xf32>
    %59 = math.exp %58 : vector<8x8xf32>
    %cst_32 = arith.constant dense<0.000000e+00> : vector<8xf32>
    %60 = vector.multi_reduction <add>, %59, %cst_32 [1] : vector<8x8xf32> to vector<8xf32>
    %61 = vector.shape_cast %60 : vector<8xf32> to vector<8x1xf32>
    %62 = tpu.reciprocal %61 {approx = true} : vector<8x1xf32> -> vector<8x1xf32>
    %63 = vector.broadcast %62 : vector<8x1xf32> to vector<8x8xf32>
    %64 = arith.mulf %59, %63 : vector<8x8xf32>
    %65 = arith.truncf %64 : vector<8x8xf32> to vector<8x8xbf16>
    %c0_33 = arith.constant 0 : index
    %c0_34 = arith.constant 0 : index
    %66 = vector.load %arg20[%c0_33, %c0_34] : memref<8x128xbf16, #tpu.memory_space<vmem>>, vector<8x128xbf16>
    %cst_35 = arith.constant dense<0.000000e+00> : vector<8x128xf32>
    %67 = tpu.matmul %65, %66, %cst_35 {dimension_numbers = #tpu.dot_dimension_numbers<[1], [0], [0], [1], [0, 0, 1, 1], [], []>} : vector<8x8xbf16>, vector<8x128xbf16>, vector<8x128xf32> -> vector<8x128xf32>
    %68 = arith.truncf %67 : vector<8x128xf32> to vector<8x128xbf16>
    %c0_36 = arith.constant 0 : index
    %c0_37 = arith.constant 0 : index
    %69 = vector.load %arg14[%c0_36, %c0_37] : memref<128x128xbf16, #tpu.memory_space<vmem>>, vector<128x128xbf16>
    %cst_38 = arith.constant dense<0.000000e+00> : vector<8x128xf32>
    %70 = tpu.matmul %68, %69, %cst_38 {dimension_numbers = #tpu.dot_dimension_numbers<[1], [0], [0], [1], [0, 0, 1, 1], [], []>} : vector<8x128xbf16>, vector<128x128xbf16>, vector<8x128xf32> -> vector<8x128xf32>
    %c0_39 = arith.constant 0 : index
    %c0_40 = arith.constant 0 : index
    %71 = vector.load %arg15[%c0_39, %c0_40] : memref<1x128xf32, #tpu.memory_space<vmem>>, vector<1x128xf32>
    %72 = vector.shape_cast %71 : vector<1x128xf32> to vector<128xf32>
    %73 = vector.shape_cast %72 : vector<128xf32> to vector<1x128xf32>
    %74 = vector.broadcast %73 : vector<1x128xf32> to vector<8x128xf32>
    %75 = arith.addf %70, %74 : vector<8x128xf32>
    %c0_41 = arith.constant 0 : index
    %c0_42 = arith.constant 0 : index
    %c0_43 = arith.constant 0 : index
    %76 = vector.load %arg16[%c0_41, %c0_42, %c0_43] : memref<1x8x128xf32, #tpu.memory_space<vmem>>, vector<1x8x128xf32>
    %77 = vector.shape_cast %76 : vector<1x8x128xf32> to vector<8x128xf32>
    %78 = vector.shape_cast %75 : vector<8x128xf32> to vector<1x8x128xf32>
    tpu.vector_store %arg16[%c0_41, %c0_42, %c0_43], %78 {strides = array<i32>} : memref<1x8x128xf32, #tpu.memory_space<vmem>>, vector<1x8x128xf32>,
    return
  }
  func.func @transform_0(%arg0: i32, %arg1: i32) -> (i32, i32, i32) {
    %c0_i32 = arith.constant 0 : i32
    %c0_i32_0 = arith.constant 0 : i32
    return %arg0, %arg1, %c0_i32 : i32, i32, i32
  }
  func.func @transform_1(%arg0: i32, %arg1: i32) -> (i32, i32, i32) {
    %c0_i32 = arith.constant 0 : i32
    %c0_i32_0 = arith.constant 0 : i32
    %c0_i32_1 = arith.constant 0 : i32
    return %arg0, %c0_i32, %c0_i32_0 : i32, i32, i32
  }
  func.func @transform_2(%arg0: i32, %arg1: i32) -> (i32, i32, i32) {
    %c0_i32 = arith.constant 0 : i32
    %c0_i32_0 = arith.constant 0 : i32
    %c0_i32_1 = arith.constant 0 : i32
    return %arg0, %c0_i32, %c0_i32_0 : i32, i32, i32
  }
  func.func @transform_3(%arg0: i32, %arg1: i32) -> (i32, i32, i32) {
    %c0_i32 = arith.constant 0 : i32
    %c0_i32_0 = arith.constant 0 : i32
    %c0_i32_1 = arith.constant 0 : i32
    return %arg0, %c0_i32, %c0_i32_0 : i32, i32, i32
  }
  func.func @transform_4(%arg0: i32, %arg1: i32) -> (i32, i32) {
    %c0_i32 = arith.constant 0 : i32
    %c0_i32_0 = arith.constant 0 : i32
    %c0_i32_1 = arith.constant 0 : i32
    return %c0_i32, %c0_i32_0 : i32, i32
  }
  func.func @transform_5(%arg0: i32, %arg1: i32) -> (i32, i32) {
    %c0_i32 = arith.constant 0 : i32
    %c0_i32_0 = arith.constant 0 : i32
    %c0_i32_1 = arith.constant 0 : i32
    return %c0_i32, %c0_i32_0 : i32, i32
  }
  func.func @transform_6(%arg0: i32, %arg1: i32) -> (i32, i32) {
    %c0_i32 = arith.constant 0 : i32
    %c0_i32_0 = arith.constant 0 : i32
    %c0_i32_1 = arith.constant 0 : i32
    return %c0_i32, %c0_i32_0 : i32, i32
  }
  func.func @transform_7(%arg0: i32, %arg1: i32) -> (i32, i32) {
    %c0_i32 = arith.constant 0 : i32
    %c0_i32_0 = arith.constant 0 : i32
    %c0_i32_1 = arith.constant 0 : i32
    return %c0_i32, %c0_i32_0 : i32, i32
  }
  func.func @transform_8(%arg0: i32, %arg1: i32) -> (i32, i32) {
    %c0_i32 = arith.constant 0 : i32
    %c0_i32_0 = arith.constant 0 : i32
    %c0_i32_1 = arith.constant 0 : i32
    return %c0_i32, %c0_i32_0 : i32, i32
  }
  func.func @transform_9(%arg0: i32, %arg1: i32) -> (i32, i32) {
    %c0_i32 = arith.constant 0 : i32
    %c0_i32_0 = arith.constant 0 : i32
    %c0_i32_1 = arith.constant 0 : i32
    return %c0_i32, %c0_i32_0 : i32, i32
  }
  func.func @transform_10(%arg0: i32, %arg1: i32) -> (i32, i32) {
    %c0_i32 = arith.constant 0 : i32
    %c0_i32_0 = arith.constant 0 : i32
    %c0_i32_1 = arith.constant 0 : i32
    return %c0_i32, %c0_i32_0 : i32, i32
  }
  func.func @transform_11(%arg0: i32, %arg1: i32) -> (i32, i32) {
    %c0_i32 = arith.constant 0 : i32
    %c0_i32_0 = arith.constant 0 : i32
    %c0_i32_1 = arith.constant 0 : i32
    return %c0_i32, %c0_i32_0 : i32, i32
  }
  func.func @transform_12(%arg0: i32, %arg1: i32) -> (i32, i32) {
    %c0_i32 = arith.constant 0 : i32
    %c0_i32_0 = arith.constant 0 : i32
    %c0_i32_1 = arith.constant 0 : i32
    return %c0_i32, %c0_i32_0 : i32, i32
  }
  func.func @transform_13(%arg0: i32, %arg1: i32) -> (i32, i32) {
    %c0_i32 = arith.constant 0 : i32
    %c0_i32_0 = arith.constant 0 : i32
    %c0_i32_1 = arith.constant 0 : i32
    return %c0_i32, %c0_i32_0 : i32, i32
  }
  func.func @transform_14(%arg0: i32, %arg1: i32) -> (i32, i32, i32) {
    %c0_i32 = arith.constant 0 : i32
    %c0_i32_0 = arith.constant 0 : i32
    return %arg0, %arg1, %c0_i32 : i32, i32, i32
  }
}

</mosaic_0001>

<bundles_post_ra>
// kernel: tpu_custom_call.1
= control target key start
LH: loop header
LB: loop body
LE: loop exit
PB: predicated region body
PF: predicated region fallthrough
CT: control target
= control target key end

     0   :  { %s2480_s0 = inlined_call_operand.vmem [shape: f32[2,8,1], index: 0, kind: input, shape index: {}]   ;;  %s2481_s1 = inlined_call_operand.vmem [shape: f32[2,1,8], index: 1, kind: input, shape index: {}]   ;;  %s2482_s2 = inlined_call_operand.vmem [shape: bf16[2,8,128], index: 2, kind: input, shape index: {}]   ;;  %s2483_s3 = inlined_call_operand.vmem [shape: bf16[2,8,128], index: 3, kind: input, shape index: {}]   ;;  %s2484_s4 = inlined_call_operand.hbm [shape: bf16[128,128], index: 4, kind: input, shape index: {}]   ;;  %s2485_s5 = inlined_call_operand.hbm [shape: f32[1,128], index: 5, kind: input, shape index: {}]   ;;  %s2486_s6 = inlined_call_operand.hbm [shape: bf16[128,256], index: 6, kind: input, shape index: {}]   ;;  %s2487_s7 = inlined_call_operand.vmem [shape: f32[1,256], index: 7, kind: input, shape index: {}]   ;;  %s2488_s8 = inlined_call_operand.hbm [shape: bf16[128,128], index: 8, kind: input, shape index: {}]   ;;  %s2489_s9 = inlined_call_operand.vmem [shape: f32[1,128], index: 9, kind: input, shape index: {}]   ;;  %s2490_s10 = inlined_call_operand.hbm [shape: bf16[128,256], index: 10, kind: input, shape index: {}]   ;;  %s2491_s11 = inlined_call_operand.vmem [shape: f32[1,256], index: 11, kind: input, shape index: {}]   ;;  %s2492_s12 = inlined_call_operand.hbm [shape: bf16[128,128], index: 12, kind: input, shape index: {}]   ;;  %s2493_s13 = inlined_call_operand.vmem [shape: f32[1,128], index: 13, kind: input, shape index: {}]   ;;  %s2494_s14 = inlined_call_operand.hbm [shape: f32[2,8,128], index: 14, kind: output, shape index: {}]  }
   0x1   :  { %2505 = sst [smem:[#allocation31_spill]] %s2484_s4 }
   0x2   :  { %2506 = sst [smem:[#allocation32_spill]] %s2485_s5 }
   0x3   :  { %2507 = sst [smem:[#allocation33_spill]] %s2486_s6 }
   0x4   :  { %2508 = sst [smem:[#allocation34_spill]] %s2488_s8 }
   0x5   :  { %2509 = sst [smem:[#allocation35_spill]] %s2493_s13 }
   0x6   :  { %2510 = sst [smem:[#allocation36_spill]] %s2494_s14 }
   0x7   :  { %19 = vsyncpa [#allocation7], 0 }
   0x8   :  { %20 = vsyncpa [#allocation10], 0 }
   0x9   :  { %21 = vsyncpa [#allocation13], 0 }
   0xa   :  { %22 = vsyncpa [#allocation16], 0 }
   0xb   :  { %23 = vsyncpa [#allocation8], 0 }
   0xc   :  { %25 = vsyncpa [#allocation8 + $0x1], 0  ;;  %s2256_s29 = smov 0   ;;  %s2258_s30 = smov 0  }
   0xd   :  { %s2260_s15 = smov 0   ;;  %s2262_s16 = smov 0  }
   0xe   :  { %s2264_s17 = smov 0   ;;  %s2266_s18 = smov 0  }
   0xf LB: > { %2511 = sst [smem:[#allocation23_spill]] %s2148_s29  ;;  %s1453_s19 = sadd.s32 4294967295, %s2168_s18   ;;  %s2168_s18 = sphi %s2266_s18, %s31_s18   ;;  %s2164_s17 = sphi %s2264_s17, %s2537_s17   ;;  %s2160_s16 = sphi %s2262_s16, %s2536_s16   ;;  %s2156_s15 = sphi %s2260_s15, %s2535_s15   ;;  %s2152_s30 = sphi %s2258_s30, %s2539_s30   ;;  %s2148_s29 = sphi %s2256_s29, %s2538_s29  }
  0x10   : > { %2512 = sst [smem:[#allocation24_spill]] %s2156_s15  ;;  %s1454_s20 = sadd.s32 4294967294, %s2168_s18  }
  0x11   : > { %2513 = sst [smem:[#allocation25_spill]] %s2164_s17  ;;  %s43_s21 = sadd.s32 1, %s2164_s17 }
  0x12   : > { %2514 = sst [smem:[#allocation26_spill]] %s2168_s18  ;;  %s368_s22 = sadd.s32 1, %s2156_s15 }
  0x13   : > { %p45_p0 = scmp.ge.s32.totalorder %s43_s21, 2  ;;  %p378_p1 = scmp.ne.s32.totalorder %s2156_s15, %s2152_s30 }
  0x14   : > { %p379_p2 = scmp.eq.s32.totalorder %s1453_s19, 1  ;;  %p384_p3 = scmp.ne.s32.totalorder %s2152_s30, %s2148_s29 }
  0x15   : > { %s2541_s21 = smov (%p45_p0, %s43_s21), 0  ;;  %p385_p5 = scmp.eq.s32.totalorder %s1454_s20, 1 }
  0x16   : > { %2515 = sst [smem:[#allocation27_spill]] %s2541_s21  ;;  %p2296_p4 = por %p379_p2, %p378_p1 }
  0x17   : > { %s363_s24 = ssub.s32 %s2164_s17, %s2541_s21  ;;  %p1455_p6 = scmp.ge.s32.totalorder %s2168_s18, 1 }
  0x18   : > { %s2516_s23 = scalar_select %p2296_p4, 1, 0 }
  0x19   : > { %p366_p7 = scmp.eq.s32.totalorder %s363_s24, 0  ;;  %p2303_p8 = por %p385_p5, %p384_p3 }
  0x1a   : > { %2517 = sst [smem:[#allocation28_spill]] %s2516_s23  ;;  %p392_p9 = scmp.lt.s32.totalorder %s2168_s18, 3 }
  0x1b   : > { %s2518_s25 = scalar_select %p2303_p8, 1, 0 }
  0x1c   : > { %s2309_s26 = scalar_select %p366_p7, %s2156_s15, %s368_s22  }
  0x1d   : > { %2519 = sst [smem:[#allocation29_spill]] %s2518_s25  ;;  %p2311_p10 = pnand %p1455_p6, %p392_p9 }
  0x1e   : > { %2520 = sst [smem:[#allocation30_spill]] %s2309_s26  ;;  %p2315_p11 = scmp.eq.s32.totalorder %s1453_s19, 0 }
  0x1f   : > { %s2523_s5 = sld [smem:[#allocation32_spill]]  ;;  %p1786_p12 = pneg %p2311_p10 }
  0x20   : > { %s2170_s17 = smov [#allocation9]   ;;  %s2525_s8 = sld [smem:[#allocation34_spill]] }
  0x21   : > { %s427_s22 = sshll.u32 %s2170_s17, 4  ;;  %p2326_p13 = pnand %p2315_p11, %p1786_p12  ;;  %s428_s22 = int_to_ptr.vmem [resolvable:$true] %s427_s22 }
  0x22   : > { %s2171_s21 = smov [#allocation12]   ;;  %s2526_s4 = sld [smem:[#allocation31_spill]] }
  0x23   : > { %s455_s20 = sshll.u32 %s2171_s21, 4  ;;  %s2172_s18 = smov 64   ;;  %s456_s20 = int_to_ptr.vmem [resolvable:$true] %s455_s20 }
  0x24   : > { %s2173_s13 = smov 4   ;;  %s2174_s15 = smov [#allocation6]  }
  0x25   : > { %s425_s24 = sshll.u32 %s2523_s5, 4  ;;  %s412_s19 = sshll.u32 %s2174_s15, 4  ;;  %s426_s24 = int_to_ptr.hbm [resolvable:$true] %s425_s24  ;;  %s413_s19 = int_to_ptr.vmem [resolvable:$true] %s412_s19 }
  0x26   : > { %s453_s25 = sshll.u32 %s2525_s8, 4  ;;  %s2527_s6 = sld [smem:[#allocation33_spill]]  ;;  %s454_s25 = int_to_ptr.hbm [resolvable:$true] %s453_s25 }
  0x27   : > { %1792 = dma.hbm_to_vmem [thread:$0]  (!%p2326_p13), %s426_s24, 16, %s428_s22, [#allocation10]  }
  0x28   : > { %s410_s29 = sshll.u32 %s2526_s4, 4  ;;  %s2175_s5 = smov [#allocation11]   ;;  %s411_s29 = int_to_ptr.hbm [resolvable:$true] %s410_s29 }
  0x29   : > { %1798 = dma.hbm_to_vmem [thread:$0]  (!%p2326_p13), %s454_s25, 1024, %s456_s20, [#allocation13], %s2172_s18, %s2172_s18, %s2173_s13  }
  0x2a   : > { %1789 = dma.hbm_to_vmem [thread:$0]  (!%p2326_p13), %s411_s29, 1024, %s413_s19, [#allocation7], %s2172_s18, %s2172_s18, %s2173_s13  }
  0x2b   : > { %s438_s21 = sshll.u32 %s2175_s5, 4  ;;  %s470_s17 = sshll.u32 %s2490_s10, 4  ;;  %s439_s21 = int_to_ptr.vmem [resolvable:$true] %s438_s21  ;;  %s471_s17 = int_to_ptr.hbm [resolvable:$true] %s470_s17 }
  0x2c   : > { %s436_s22 = sshll.u32 %s2527_s6, 4  ;;  %s2176_s15 = smov 128   ;;  %s437_s22 = int_to_ptr.hbm [resolvable:$true] %s436_s22 }
  0x2d   : > { %s2177_s4 = smov 8   ;;  %s2178_s8 = smov [#allocation14]  }
  0x2e   : > { %1795 = dma.hbm_to_vmem [thread:$0]  (!%p2326_p13), %s437_s22, 2048, %s439_s21, [#allocation10], %s2176_s15, %s2176_s15, %s2177_s4  }
  0x2f   : > { %s472_s24 = sshll.u32 %s2178_s8, 4  ;;  %s487_s14 = sshll.u32 %s2492_s12, 4  ;;  %s473_s24 = int_to_ptr.vmem [resolvable:$true] %s472_s24  ;;  %s488_s14 = int_to_ptr.hbm [resolvable:$true] %s487_s14 }
  0x30   : > { %1801 = dma.hbm_to_vmem [thread:$0]  (!%p2326_p13), %s471_s17, 2048, %s473_s24, [#allocation13], %s2176_s15, %s2176_s15, %s2177_s4  }
  0x31   : > { %s2179_s29 = smov [#allocation15]   ;;  %531 = sbr.rel (%p2311_p10) target bundleno = 1561 (0x619), region = 76 }
  0x32   : > { %s489_s19 = sshll.u32 %s2179_s29, 4  ;;  %s490_s19 = int_to_ptr.vmem [resolvable:$true] %s489_s19 }
  0x33   : > { %1804 = dma.hbm_to_vmem [thread:$0]  (!%p2326_p13), %s488_s14, 1024, %s490_s19, [#allocation16], %s2172_s18, %s2172_s18, %s2173_s13  }
  0x36   : > { %2127 = dma.done.wait (%p2315_p11), [#allocation7], 1024  }
  0x37   : > { %2129 = vsyncadd (%p2315_p11), [#allocation7], 4294966272 }
  0x38   : > { %2131 = dma.done.wait (%p2315_p11), [#allocation10], 2064  }
  0x39   : > { %2133 = vsyncadd (%p2315_p11), [#allocation10], 4294965232 }
  0x3a   : > { %2135 = dma.done.wait (%p2315_p11), [#allocation13], 3072  }
  0x3b   : > { %2137 = vsyncadd (%p2315_p11), [#allocation13], 4294964224 }
  0x3c   : > { %2139 = dma.done.wait (%p2315_p11), [#allocation16], 1024  }
  0x3d   : > { %2141 = vsyncadd (%p2315_p11), [#allocation16], 4294966272  ;;  %v1532_v0 = vld [vmem:[#allocation11 + $0x70] sm:$0xf]  ;;  %v1719_v1 = vld [vmem:[#allocation11 + $0x74] sm:$0xf0] }
  0x3e   : > { %v1524_v2 = vld [vmem:[#allocation11 + $0x60] sm:$0xf]  ;;  %v1533_v3 = vor.u32 %v1719_v1, %v1532_v0  ;;  %v1717_v4 = vld [vmem:[#allocation11 + $0x64] sm:$0xf0]  ;;  %v1516_v6 = vld [vmem:[#allocation11 + $0x50] sm:$0xf] }
  0x3f   : > { %v1525_v5 = vor.u32 %v1717_v4, %v1524_v2  ;;  %v1715_v7 = vld [vmem:[#allocation11 + $0x54] sm:$0xf0]  ;;  %v1508_v9 = vld [vmem:[#allocation11 + $0x40] sm:$0xf]  ;;  %v1713_v10 = vld [vmem:[#allocation11 + $0x44] sm:$0xf0] }
  0x40   : > { %743 = vmatpush.bf16.msra.mxu0 %v1533_v3  ;;  %v1517_v8 = vor.u32 %v1715_v7, %v1516_v6  ;;  %v1509_v11 = vor.u32 %v1713_v10, %v1508_v9  ;;  %v1500_v12 = vld [vmem:[#allocation11 + $0x30] sm:$0xf]  ;;  %v1711_v13 = vld [vmem:[#allocation11 + $0x34] sm:$0xf0]  ;;  %v1492_v15 = vld [vmem:[#allocation11 + $0x20] sm:$0xf] }
  0x41   : > { %v1501_v14 = vor.u32 %v1711_v13, %v1500_v12  ;;  %v1709_v16 = vld [vmem:[#allocation11 + $0x24] sm:$0xf0]  ;;  %p616_p0 = scmp.lt.s32.totalorder %s2160_s16, 1  ;;  %v1484_v18 = vld [vmem:[#allocation11 + $0x10] sm:$0xf]  ;;  %v1743_v24 = vld [vmem:[#allocation6 + $0x38] sm:$0xff] }
  0x42   : > { %v1493_v17 = vor.u32 %v1709_v16, %v1492_v15  ;;  %v1707_v19 = vld [vmem:[#allocation11 + $0x14] sm:$0xf0]  ;;  %v1476_v21 = vld [vmem:[#allocation11] sm:$0xf]  ;;  %v1705_v22 = vld [vmem:[#allocation11 + $0x4] sm:$0xf0] }
  0x43   : > { %s2386_s4 = scalar_select %p616_p0, %s2160_s16, 1  ;;  %v1485_v20 = vor.u32 %v1707_v19, %v1484_v18  ;;  %v1477_v23 = vor.u32 %v1705_v22, %v1476_v21  ;;  %v1718_v26 = vld [vmem:[#allocation11 + $0x74] sm:$0xf]  ;;  %v1534_v27 = vld [vmem:[#allocation11 + $0x78] sm:$0xf0]  ;;  %v1741_v35 = vld [vmem:[#allocation6 + $0x28] sm:$0xff] }
  0x44   : > { %744 = vmatpush.bf16.msra.mxu0 %v1525_v5  ;;  %v1716_v28 = vld [vmem:[#allocation11 + $0x64] sm:$0xf]  ;;  %v1742_v29 = vld [vmem:[#allocation6 + $0x30] sm:$0xff]  ;;  %v1537_v30 = vor.u32 %v1718_v26, %v1534_v27  ;;  %v1518_v34 = vld [vmem:[#allocation11 + $0x58] sm:$0xf0]  ;;  %v2180_v1 = vmov 0  }
  0x45   : > { %s1472_s6 = sshll.u32 %s2386_s4, 2  ;;  %v1526_v31 = vld [vmem:[#allocation11 + $0x68] sm:$0xf0]  ;;  %v1714_v33 = vld [vmem:[#allocation11 + $0x54] sm:$0xf]  ;;  %v1740_v39 = vld [vmem:[#allocation6 + $0x20] sm:$0xff]  ;;  %s625_s27 = scalar_lea.vmem %s2481_s1, %s2386_s4  ;;  %1881 = vset.pattern.permute.xlu0 %v2180_v1 }
  0x46   : > { %s2394_s18 = scalar_lea.vmem %s2482_s2, %s1472_s6  ;;  %756 = vmatpush.bf16.msra.mxu1 %v1537_v30  ;;  %v1529_v32 = vor.u32 %v1716_v28, %v1526_v31  ;;  %v1521_v36 = vor.u32 %v1714_v33, %v1518_v34  ;;  %v1712_v37 = vld [vmem:[#allocation11 + $0x44] sm:$0xf]  ;;  %v1510_v38 = vld [vmem:[#allocation11 + $0x48] sm:$0xf0]  ;;  %v1710_v41 = vld [vmem:[#allocation11 + $0x34] sm:$0xf]  ;;  %s633_s29 = scalar_lea.vmem %s2483_s3, %s1472_s6 }
  0x47   : > { %v639_v25 = vld [vmem:[%s2394_s18] sm:$0xf]  ;;  %v1513_v40 = vor.u32 %v1712_v37, %v1510_v38  ;;  %v1502_v42 = vld [vmem:[#allocation11 + $0x38] sm:$0xf0]  ;;  %v1708_v45 = vld [vmem:[#allocation11 + $0x24] sm:$0xf] }
  0x48   : > { %745 = vmatpush.bf16.msra.mxu0 %v1517_v8  ;;  %v1739_v43 = vld [vmem:[#allocation6 + $0x18] sm:$0xff]  ;;  %v1505_v44 = vor.u32 %v1710_v41, %v1502_v42  ;;  %v1494_v46 = vld [vmem:[#allocation11 + $0x28] sm:$0xf0]  ;;  %v1736_v50 = vld [vmem:[#allocation6] sm:$0xff]  ;;  %s1471_s5 = sshll.u32 %s2386_s4, 3  ;;  %vm1037_vm0 = vcmask 1043456  }
  0x49   : > { %v1738_v47 = vld [vmem:[#allocation6 + $0x10] sm:$0xff]  ;;  %v1497_v48 = vor.u32 %v1708_v45, %v1494_v46  ;;  %v1737_v49 = vld [vmem:[#allocation6 + $0x8] sm:$0xff]  ;;  %v1486_v53 = vld [vmem:[#allocation11 + $0x18] sm:$0xf0]  ;;  %s622_s20 = scalar_lea.vmem %s2480_s0, %s1471_s5  ;;  %vm1020_vm2 = vcmask 64512   ;;  %s613_s14 = sand.u32 1, %s2152_s30  }
  0x4a   : > { %757 = vmatpush.bf16.msra.mxu1 %v1529_v32  ;;  %v922_v51 = vld [vmem:[%s2394_s18] sm:$0xf]  ;;  %v1706_v52 = vld [vmem:[#allocation11 + $0x14] sm:$0xf]  ;;  %v1704_v55 = vld [vmem:[#allocation11 + $0x4] sm:$0xf] }
  0x4b   : > { %v1489_v54 = vor.u32 %v1706_v52, %v1486_v53  ;;  %v1478_v56 = vld [vmem:[#allocation11 + $0x8] sm:$0xf0]  ;;  %v1596_v0 = vld [vmem:[#allocation14 + $0x70] sm:$0xf]  ;;  %v1735_v2 = vld [vmem:[#allocation14 + $0x74] sm:$0xf0] }
  0x4c   : > { %746 = vmatpush.bf16.msra.mxu0 %v1509_v11  ;;  %v1481_v57 = vor.u32 %v1704_v55, %v1478_v56  ;;  %v657_v58 = vld [vmem:[%s2487_s7] sm:$0x3]  ;;  %v1588_v3 = vld [vmem:[#allocation14 + $0x60] sm:$0xf]  ;;  %v1733_v4 = vld [vmem:[#allocation14 + $0x64] sm:$0xf0]  ;;  %v1597_v5 = vor.u32 %v1735_v2, %v1596_v0 }
  0x4d   : > { %v659_v59 = vperm.slane %v657_v58, 0  ;;  %v905_v63 = vld [vmem:[%s622_s20] sm:$0xff]  ;;  %v1589_v7 = vor.u32 %v1733_v4, %v1588_v3  ;;  %v1882_v9 = vld [vmem:[#allocation9] ss:$0 sm:$0xff]  ;;  %v1731_v15 = vld [vmem:[#allocation14 + $0x54] sm:$0xf0] }
  0x4e   : > { %758 = vmatpush.bf16.msra.mxu1 %v1521_v36  ;;  %909 = vperm.xlu0 %1881, %v905_v63   ;;  %v1572_v16 = vld [vmem:[#allocation14 + $0x40] sm:$0xf]  ;;  %v1729_v18 = vld [vmem:[#allocation14 + $0x44] sm:$0xf0]  ;;  %v1727_v21 = vld [vmem:[#allocation14 + $0x34] sm:$0xf0] }
  0x4f   : > { %875 = vmatpush.bf16.msra.mxu2 %v1597_v5  ;;  %v1573_v19 = vor.u32 %v1729_v18, %v1572_v16  ;;  %v1548_v26 = vld [vmem:[#allocation14 + $0x10] sm:$0xf]  ;;  %v1723_v27 = vld [vmem:[#allocation14 + $0x14] sm:$0xf0]  ;;  %v1721_v30 = vld [vmem:[#allocation14 + $0x4] sm:$0xf0] }
  0x50   : > { %747 = vmatpush.bf16.msra.mxu0 %v1501_v14  ;;  %v1580_v14 = vld [vmem:[#allocation14 + $0x50] sm:$0xf]  ;;  %v1549_v28 = vor.u32 %v1723_v27, %v1548_v26  ;;  %v660_v32 = vperm.slane %v657_v58, 1  ;;  %v1734_v52 = vld [vmem:[#allocation14 + $0x74] sm:$0xf]  ;;  %v1748_v26 = vld [vmem:[#allocation12 + $0x20] sm:$0xff] }
  0x51   : > { %v640_v46 = vld [vmem:[%s633_s29] sm:$0xf]  ;;  %v1598_v53 = vld [vmem:[#allocation14 + $0x78] sm:$0xf0]  ;;  %v1730_v58 = vld [vmem:[#allocation14 + $0x54] sm:$0xf] }
  0x52   : > { %759 = vmatpush.bf16.msra.mxu1 %v1513_v40  ;;  %v1601_v55 = vor.u32 %v1734_v52, %v1598_v53  ;;  %v1590_v56 = vld [vmem:[#allocation14 + $0x68] sm:$0xf0]  ;;  %v1728_v0 = vld [vmem:[#allocation14 + $0x44] sm:$0xf]  ;;  %v1726_v5 = vld [vmem:[#allocation14 + $0x34] sm:$0xf] }
  0x53   : > { %876 = vmatpush.bf16.msra.mxu2 %v1589_v7  ;;  %v1574_v1 = vld [vmem:[#allocation14 + $0x48] sm:$0xf0]  ;;  %v1720_v16 = vld [vmem:[#allocation14 + $0x4] sm:$0xf]  ;;  %v1747_v27 = vld [vmem:[#allocation12 + $0x18] sm:$0xff]  ;;  %s1701_s18 = sshll.u32 %s2160_s16, 3 }
  0x54   : > { %748 = vmatpush.bf16.msra.mxu0 %v1493_v17  ;;  %v1581_v17 = vor.u32 %v1731_v15, %v1580_v14  ;;  %888 = vmatpush.bf16.msra.mxu3 %v1601_v55  ;;  %v1577_v4 = vor.u32 %v1728_v0, %v1574_v1  ;;  %v1550_v14 = vld [vmem:[#allocation14 + $0x18] sm:$0xf0]  ;;  %s1470_s23 = sshll.u32 %s613_s14, 3  ;;  %s2528_s28 = sld [smem:[#allocation36_spill]] }
  0x55   : > { %s2530_s20 = sld [smem:[#allocation35_spill]]  ;;  %s615_s17 = scalar_lea.vmem [#allocation17], %s1470_s23 }
  0x56   : > { %760 = vmatpush.bf16.msra.mxu1 %v1505_v44  ;;  %s1281_s15 = sshll.u32 %s615_s17, 4  ;;  %s1268_s24 = scalar_lea.sflag [#allocation8], %s613_s14  ;;  %s1282_s15 = int_to_ptr.vmem [resolvable:$true] %s1281_s15 }
  0x57   : > { %877 = vmatpush.bf16.msra.mxu2 %v1581_v17  ;;  %v1542_v17 = vld [vmem:[#allocation14 + $0x8] sm:$0xf0] }
  0x58   : > { %749 = vmatpush.bf16.msra.mxu0 %v1485_v20  ;;  %v1564_v20 = vld [vmem:[#allocation14 + $0x30] sm:$0xf] }
  0x59   : > { %v1565_v22 = vor.u32 %v1727_v21, %v1564_v20  ;;  %v1545_v20 = vor.u32 %v1720_v16, %v1542_v17 }
  0x5a   : > { %761 = vmatpush.bf16.msra.mxu1 %v1497_v48  ;;  %s1279_s5 = scalar_lea.hbm %s2528_s28, %s1701_s18  ;;  %s2094_s6 = scalar_lea.hbm %s2528_s28, 16 }
  0x5b   : > { %878 = vmatpush.bf16.msra.mxu2 %v1573_v19  ;;  %s1283_s8 = sshll.u32 %s1279_s5, 4  ;;  %s1284_s8 = int_to_ptr.hbm [resolvable:$true] %s1283_s8 }
  0x5c   : > { %750 = vmatpush.bf16.msra.mxu0 %v1477_v23  ;;  %v1556_v23 = vld [vmem:[#allocation14 + $0x20] sm:$0xf]  ;;  %s2088_s16 = sshra.s32 %s1284_s8, 4  ;;  %s2089_s16 = int_to_ptr.hbm [resolvable:$true] %s2088_s16 }
  0x5d   : > { %s2090_s29 = scalar_lea.hbm %s2089_s16, 8  ;;  %p2095_p5 = scmp.lt.s32.totalorder %s2089_s16, %s2528_s28 }
  0x5e   : > { %762 = vmatpush.bf16.msra.mxu1 %v1489_v54  ;;  %v1732_v54 = vld [vmem:[#allocation14 + $0x64] sm:$0xf]  ;;  %p2091_p1 = scmp.ne.s32.totalorder %s2089_s16, %s2090_s29  ;;  %p2096_p6 = scmp.lt.s32.totalorder %s2094_s6, %s2090_s29 }
  0x5f   : > { %751 = vmatmul.bf16.vlgmr.msra.gmra.mxu0 %v639_v25  ;;  %879 = vmatpush.bf16.msra.mxu2 %v1565_v22  ;;  %v1751_v22 = vld [vmem:[#allocation12 + $0x38] sm:$0xff] }
  0x60   : > { %991 = vmatpush.bf16.msrb.mxu0 %v1743_v24  ;;  %v1725_v24 = vld [vmem:[#allocation14 + $0x24] sm:$0xf0]  ;;  %p2092_p2 = pnand %p2091_p1, %p2296_p4  ;;  %p2097_p7 = por %p2096_p6, %p2095_p5 }
  0x62   : > { %763 = vmatpush.bf16.msra.mxu1 %v1481_v57  ;;  %v1593_v57 = vor.u32 %v1732_v54, %v1590_v56  ;;  %v1759_v56 = vld [vmem:[#allocation15 + $0x38] sm:$0xff]  ;;  %p2093_p3 = pneg %p2092_p2 }
  0x64   : > { %992 = vmatpush.bf16.msrb.mxu0 %v1742_v29  ;;  %v1540_v29 = vld [vmem:[#allocation14] sm:$0xf]  ;;  %889 = vmatpush.bf16.msra.mxu3 %v1593_v57  ;;  %v1758_v57 = vld [vmem:[#allocation15 + $0x30] sm:$0xff]  ;;  %p2098_p9 = pnand %p2097_p7, %p2093_p3 }
  0x65   : > { %764 = vmatmul.bf16.vlgmr.msra.gmra.mxu1 %v639_v25  ;;  %v1557_v25 = vor.u32 %v1725_v24, %v1556_v23  ;;  %v1541_v31 = vor.u32 %v1721_v30, %v1540_v29  ;;  %v1750_v24 = vld [vmem:[#allocation12 + $0x30] sm:$0xff]  ;;  %v1745_v29 = vld [vmem:[#allocation12 + $0x8] sm:$0xff]  ;;  %v1744_v30 = vld [vmem:[#allocation12] sm:$0xff] }
  0x67   : > { %880 = vmatpush.bf16.msra.mxu2 %v1557_v25  ;;  %v1749_v25 = vld [vmem:[#allocation12 + $0x28] sm:$0xff] }
  0x68   : > { %993 = vmatpush.bf16.msrb.mxu0 %v1741_v35 }
  0x6b   : > { %881 = vmatpush.bf16.msra.mxu2 %v1549_v28  ;;  %v1746_v28 = vld [vmem:[#allocation12 + $0x10] sm:$0xff] }
  0x6c   : > { %994 = vmatpush.bf16.msrb.mxu0 %v1740_v39  ;;  %v1883_v39 = vld [vmem:[%s625_s27] ss:$0 sm:$0xff] }
  0x6f   : > { %882 = vmatpush.bf16.msra.mxu2 %v1541_v31 }
  0x70   : > { %995 = vmatpush.bf16.msrb.mxu0 %v1739_v43 }
  0x72   : > { %883 = vmatmul.bf16.vlgmr.msra.gmra.mxu2 %v640_v46 }
  0x74   : > { %996 = vmatpush.bf16.msrb.mxu0 %v1738_v47 }
  0x78   : > { %997 = vmatpush.bf16.msrb.mxu0 %v1737_v49 }
  0x7c   : > { %998 = vmatpush.bf16.msrb.mxu0 %v1736_v50 }
  0x7f   : > { %999 = vmatmul.bf16.vlgmr.msrb.gmra.mxu0 %v922_v51 }
  0x80   : > { %1253 = vmatpush.bf16.msra.mxu0 %v1759_v56 }
  0x84   : > { %1254 = vmatpush.bf16.msra.mxu0 %v1758_v57 }
  0xc0   : > { %v910_v40 = vpop.permute.xlu0 %909 }
  0xc1   : > { %v2415_v41 = vmul.f32 %v1883_v39, %v910_v40 }
  0xc3   : > { %vm916_vm1 = vcmp.eq.f32.partialorder %v2415_v41, 0.0  ;;  %v1756_v41 = vld [vmem:[#allocation15 + $0x20] sm:$0xff] }
  0xdc   : > { %v752_v60 = vpop.f32.mrf.mxu0 }
  0xdd   : > { %v753_v61 = vadd.f32 %v752_v60, %v659_v59  ;;  %v1582_v59 = vld [vmem:[#allocation14 + $0x58] sm:$0xf0]  ;;  %v789_v60 = vld [vmem:[%s2491_s11] sm:$0x3] }
  0xde   : > { %v1585_v63 = vor.u32 %v1730_v58, %v1582_v59  ;;  %v792_v31 = vperm.slane %v789_v60, 1  ;;  %v1757_v58 = vld [vmem:[#allocation15 + $0x28] sm:$0xff]  ;;  %v1755_v59 = vld [vmem:[#allocation15 + $0x18] sm:$0xff] }
  0xdf   : > { %v769_v62 = vpack.c.bf16 %v753_v61, %v753_v61  ;;  %1255 = vmatpush.bf16.msra.mxu0 %v1757_v58 }
  0xe0   : > { %890 = vmatpush.bf16.msra.mxu3 %v1585_v63 }
  0xe1   : > { %770 = vst [vmem:[#allocation2] sm:$0xf] %v769_v62  ;;  %v791_v62 = vperm.slane %v789_v60, 0  ;;  %v1754_v60 = vld [vmem:[#allocation15 + $0x10] sm:$0xff] }
  0xe2   : > { %v765_v33 = vpop.f32.mrf.mxu1 }
  0xe3   : > { %v766_v34 = vadd.f32 %v765_v33, %v660_v32  ;;  %1256 = vmatpush.bf16.msra.mxu0 %v1756_v41 }
  0xe4   : > { %v754_v6 = vpop.f32.mrf.mxu0  ;;  %891 = vmatpush.bf16.msra.mxu3 %v1577_v4 }
  0xe5   : > { %v771_v35 = vpack.c.bf16 %v766_v34, %v766_v34  ;;  %v1566_v6 = vld [vmem:[#allocation14 + $0x38] sm:$0xf0] }
  0xe7   : > { %772 = vst [vmem:[#allocation3] sm:$0xf] %v771_v35  ;;  %1257 = vmatpush.bf16.msra.mxu0 %v1755_v59 }
  0xe8   : > { %v1005_v8 = vld [vmem:[#allocation2] sm:$0xf] }
  0xe9   : > { %1013 = vmatpush.bf16.xpose.msrb.mxu1 %v1005_v8  ;;  %v1569_v8 = vor.u32 %v1726_v5, %v1566_v6  ;;  %v1885_v6 = vld [vmem:[%s2530_s20] ss:$0 sm:$0xff] }
  0xea   : > { %v767_v36 = vpop.f32.mrf.mxu1 }
  0xeb   : > { %892 = vmatpush.bf16.msra.mxu3 %v1569_v8  ;;  %1258 = vmatpush.bf16.msra.mxu0 %v1754_v60 }
  0xee   : > { %v1033_v37 = vld [vmem:[#allocation3] sm:$0xf] }
  0xef   : > { %v1039_v38 = vsel %vm1037_vm0, %v1033_v37, 0 }
  0xf0   : > { %1048 = vmatpush.bf16.msrb.mxu2 %v1039_v38 }
  0xf5   : > { %v884_v61 = vpop.f32.mrf.mxu2 }
  0xf6   : > { %v885_v2 = vadd.f32 %v884_v61, %v791_v62  ;;  %v1753_v62 = vld [vmem:[#allocation15 + $0x8] sm:$0xff] }
  0xf7   : > { %1259 = vmatpush.bf16.msra.mxu0 %v1753_v62 }
  0xf8   : > { %v901_v3 = vpack.c.bf16 %v885_v2, %v885_v2  ;;  %v1752_v2 = vld [vmem:[#allocation15] sm:$0xff] }
  0xfa   : > { %902 = vst [vmem:[#allocation4] sm:$0xf] %v901_v3 }
  0xfb   : > { %1260 = vmatpush.bf16.msra.mxu0 %v1752_v2 }
  0xfc   : > { %v1000_v10 = vpop.f32.mrf.mxu0 }
  0xfd   : > { %v1001_v11 = vadd.f32 %v1882_v9, %v1000_v10  ;;  %v886_v7 = vpop.f32.mrf.mxu2  ;;  %v1724_v9 = vld [vmem:[#allocation14 + $0x24] sm:$0xf]  ;;  %v1558_v10 = vld [vmem:[#allocation14 + $0x28] sm:$0xf0] }
  0xff   : > { %v1004_v12 = vpack.c.bf16 %v1001_v11, %v1001_v11  ;;  %v1561_v11 = vor.u32 %v1724_v9, %v1558_v10 }
 0x101   : > { %1014 = vmatmul.bf16.vlgmr.msrb.gmra.mxu1 %v1004_v12  ;;  %893 = vmatpush.bf16.msra.mxu3 %v1561_v11  ;;  %v1137_v18 = vld [vmem:[#allocation4] sm:$0xf] }
 0x102   : > { %1145 = vmatpush.bf16.xpose.msra.mxu1 %v1137_v18 }
 0x104   : > { %v1002_v13 = vpop.f32.mrf.mxu0 }
 0x105   : > { %v1722_v13 = vld [vmem:[#allocation14 + $0x14] sm:$0xf] }
 0x106   : > { %v1553_v15 = vor.u32 %v1722_v13, %v1550_v14 }
 0x108   : > { %894 = vmatpush.bf16.msra.mxu3 %v1553_v15 }
 0x10c   : > { %895 = vmatpush.bf16.msra.mxu3 %v1545_v20 }
 0x10f   : > { %896 = vmatmul.bf16.vlgmr.msra.gmra.mxu3 %v640_v46 }
 0x110   : > { %1123 = vmatpush.bf16.msrb.mxu3 %v1751_v22 }
 0x114   : > { %1124 = vmatpush.bf16.msrb.mxu3 %v1750_v24 }
 0x118   : > { %1125 = vmatpush.bf16.msrb.mxu3 %v1749_v25 }
 0x11c   : > { %1126 = vmatpush.bf16.msrb.mxu3 %v1748_v26 }
 0x120   : > { %1127 = vmatpush.bf16.msrb.mxu3 %v1747_v27 }
 0x124   : > { %1128 = vmatpush.bf16.msrb.mxu3 %v1746_v28 }
 0x128   : > { %1129 = vmatpush.bf16.msrb.mxu3 %v1745_v29 }
 0x12c   : > { %1130 = vmatpush.bf16.msrb.mxu3 %v1744_v30 }
 0x17e   : > { %v1015_v42 = vpop.f32.mrf.mxu1 }
 0x17f   : > { %v1019_v43 = vsel %vm916_vm1, -10000.0, %v1015_v42  ;;  %v1884_v42 = vld [vmem:[%s2489_s9] ss:$0 sm:$0xff] }
 0x180   : > { %v1021_v44 = vsel %vm1020_vm2, %v1019_v43, -inf }
 0x181   : > { %1022 = vmax.xlane.f32.xlu0 %v1021_v44 }
 0x186   : > { %v1017_v45 = vpop.f32.mrf.mxu1 }
 0x192   : > { %v897_v34 = vpop.f32.mrf.mxu3 }
 0x193   : > { %v898_v35 = vadd.f32 %v897_v34, %v792_v31 }
 0x195   : > { %v903_v36 = vpack.c.bf16 %v898_v35, %v898_v35 }
 0x197   : > { %904 = vst [vmem:[#allocation5] sm:$0xf] %v903_v36 }
 0x19a   : > { %v899_v38 = vpop.f32.mrf.mxu3 }
 0x19e   : > { %v1164_v39 = vld [vmem:[#allocation5] sm:$0xf] }
 0x19f   : > { %v1169_v40 = vsel %vm1037_vm0, %v1164_v39, 0 }
 0x1a0   : > { %1178 = vmatpush.bf16.msra.mxu2 %v1169_v40 }
 0x1f4   : > { %v1023_v47 = vpop.xlane.xlu0 %1022 }
 0x1f5   : > { %v1024_v48 = vsub.f32 %v1019_v43, %v1023_v47 }
 0x1f7   : > { %v1025_v49 = vmul.f32 1.442695, %v1024_v48 }
 0x1f9   : > { %1886 = vpow2.f32 %v1025_v49 }
 0x1ff   : > { %v1887_v50 = vpop.eup %1886 }
 0x200   : > { %v1027_v51 = vsel %vm1020_vm2, %v1887_v50, 0.0 }
 0x201   : > { %1028 = vadd.xlane.f32.xlu1 %v1027_v51 }
 0x274   : > { %v1029_v12 = vpop.xlane.xlu1 %1028 }
 0x275   : > { %1888 = vrcp.f32 %v1029_v12 }
 0x27b   : > { %v1889_v19 = vpop.eup %1888 }
 0x27c   : > { %v1031_v21 = vmul.f32 %v1889_v19, %v1887_v50 }
 0x27e   : > { %v1032_v23 = vpack.c.bf16 %v1031_v21, %v1031_v21 }
 0x280   : > { %1634 = vmatmul.msk.bf16.vlgmr.msrb.gmra.mxu2 %vm1020_vm2, %v1032_v23 }
 0x303   : > { %v1050_v32 = vpop.f32.mrf.mxu2 }
 0x304   : > { %v1054_v33 = vpack.c.bf16 %v1050_v32, %v1050_v32 }
 0x306   : > { %1131 = vmatmul.bf16.vlgmr.msrb.gmra.mxu3 %v1054_v33 }
 0x30b   : > { %v1052_v37 = vpop.f32.mrf.mxu2 }
 0x389   : > { %v1132_v43 = vpop.f32.mrf.mxu3 }
 0x38a   : > { %v1133_v44 = vadd.f32 %v1884_v42, %v1132_v43 }
 0x38c   : > { %v1136_v45 = vpack.c.bf16 %v1133_v44, %v1133_v44 }
 0x38e   : > { %1146 = vmatmul.bf16.vlgmr.msra.gmra.mxu1 %v1136_v45 }
 0x391   : > { %v1134_v46 = vpop.f32.mrf.mxu3 }
 0x40b   : > { %v1147_v47 = vpop.f32.mrf.mxu1 }
 0x40c   : > { %v1151_v48 = vsel %vm916_vm1, -10000.0, %v1147_v47 }
 0x40d   : > { %v1152_v49 = vsel %vm1020_vm2, %v1151_v48, -inf }
 0x40e   : > { %1153 = vmax.xlane.f32.xlu1 %v1152_v49 }
 0x413   : > { %v1149_v50 = vpop.f32.mrf.mxu1 }
 0x481   : > { %v1154_v51 = vpop.xlane.xlu1 %1153 }
 0x482   : > { %v1155_v52 = vsub.f32 %v1151_v48, %v1154_v51 }
 0x484   : > { %v1156_v53 = vmul.f32 1.442695, %v1155_v52 }
 0x486   : > { %1890 = vpow2.f32 %v1156_v53 }
 0x48c   : > { %v1891_v54 = vpop.eup %1890 }
 0x48d   : > { %v1158_v55 = vsel %vm1020_vm2, %v1891_v54, 0.0 }
 0x48e   : > { %1159 = vadd.xlane.f32.xlu2 %v1158_v55 }
 0x501   : > { %v1160_v61 = vpop.xlane.xlu2 %1159 }
 0x502   : > { %1892 = vrcp.f32 %v1160_v61 }
 0x508   : > { %v1893_v63 = vpop.eup %1892 }
 0x509   : > { %v1162_v0 = vmul.f32 %v1893_v63, %v1891_v54 }
 0x50b   : > { %v1163_v1 = vpack.c.bf16 %v1162_v0, %v1162_v0 }
 0x50d   : > { %1667 = vmatmul.msk.bf16.vlgmr.msra.gmra.mxu2 %vm1020_vm2, %v1163_v1 }
 0x590   : > { %v1180_v3 = vpop.f32.mrf.mxu2 }
 0x591   : > { %v1184_v4 = vpack.c.bf16 %v1180_v3, %v1180_v3 }
 0x593   : > { %1261 = vmatmul.bf16.vlgmr.msra.gmra.mxu0 %v1184_v4 }
 0x598   : > { %v1182_v5 = vpop.f32.mrf.mxu2 }
 0x610   : > { %v1262_v7 = vpop.f32.mrf.mxu0 }
 0x611   : > { %v1263_v8 = vadd.f32 %v1885_v6, %v1262_v7 }
 0x613   : > { %1266 = vst [vmem:[%s615_s17] sm:$0xff] %v1263_v8 }
 0x614   : > { %2101 = shalt.err (!%p2098_p9)
}
 0x615   : > { %1784 = dma.vmem_to_hbm [thread:$0]  (%p2296_p4), %s1282_s15, 128, %s1284_s8, %s1268_s24  }
 0x618   : > { %v1264_v9 = vpop.f32.mrf.mxu0 }
 0x619 PF: > { %s2531_s14 = sld [smem:[#allocation26_spill]] }
 0x61a   : > { %s2532_s23 = sld [smem:[#allocation23_spill]] }
 0x61f   : > { %p1821_p10 = scmp.ge.s32.totalorder %s2531_s14, 2 }
 0x620   : > { %s1295_s27 = sand.u32 1, %s2532_s23  }
 0x621   : > { %p1806_p11 = pnand %p1821_p10, %p2303_p8  ;;  %s1296_s5 = scalar_lea.sflag [#allocation8], %s1295_s27 }
 0x623   : > { %p1807_p12 = pneg %p1806_p11 }
 0x625   : > { %2143 = dma.done.wait (%p1807_p12), %s1296_s5, 128  }
 0x626   : > { %2145 = vsyncadd (%p1807_p12), %s1296_s5, 4294967168  ;;  %s31_s18 = sadd.s32 1, %s2531_s14   ;;  %s2534_s21 = sld [smem:[#allocation24_spill]] }
 0x627   : > { %p28_p13 = scmp.ge.s32.totalorder %s31_s18, 4   ;;  %s2535_s15 = sld [smem:[#allocation30_spill]] }
 0x628   : > { %s2536_s16 = sld [smem:[#allocation25_spill]]  ;;  %s2538_s29 = smov %s2152_s30 }
 0x629   : > { %s2537_s17 = sld [smem:[#allocation27_spill]]  ;;  %30 = sbr.rel (!%p28_p13) target bundleno = 15 (0xf), region = 150 }
 0x62c   : > { %s2539_s30 = smov %s2534_s21 }
 0x62e   :  { %1302 = vsyncpa [#allocation7], 1 }
 0x62f   :  { %1304 = vsyncpa [#allocation7 + $0x1], 1 }
 0x630   :  { %1305 = vsyncpa [#allocation10], 1 }
 0x631   :  { %1306 = vsyncpa [#allocation13], 1 }
 0x632   :  { %1307 = vsyncpa [#allocation16], 1 }
 0x633   :  { %1308 = vsyncpa [#allocation8], 1 }
 0x634   :  { %1310 = vsyncpa [#allocation8 + $0x1], 1 }

</bundles_post_ra>
